<compile_context>
chip_gen: v7x
topology: tpu7x:2x2x1
jax: 0.10.0
libtpu: 0.0.40
codegen_flags: <defaults>
</compile_context>

<pallas_src>
import jax
import jax.numpy as jnp
from jax.experimental import pallas as pl
from jax.experimental.pallas import tpu as pltpu


def _res_kernel(x_ref, w1_ref, b1_ref, w2_ref, b2_ref, o_ref):
    """Fused  SiLU(SiLU(x@W1+b1)@W2+b2) + x  on one (TM, D) row tile.

    x_ref : (TM, D) f32   activations (residual kept in f32)
    w*_ref: (D, D)  bf16  weights, stored (in, out), resident across the grid
    b*_ref: (1, D)  f32   biases
    o_ref : (TM, D) f32
    """
    x = x_ref[...]                       # f32 copy for the residual add
    # Hoist the bias reads once (avoid repeated broadcast_in_dim work).
    b1 = b1_ref[...]
    b2 = b2_ref[...]

    # Linear 1: bf16 MXU inputs, f32 accumulation; bias + SiLU in f32.
    h = jnp.dot(x.astype(jnp.bfloat16), w1_ref[...],
                preferred_element_type=jnp.float32) + b1
    h = h * jax.nn.sigmoid(h)

    # Linear 2 + SiLU.
    h2 = jnp.dot(h.astype(jnp.bfloat16), w2_ref[...],
                 preferred_element_type=jnp.float32) + b2
    h2 = h2 * jax.nn.sigmoid(h2)

    # Residual add in f32, cast to output dtype.
    o_ref[...] = (h2 + x).astype(o_ref.dtype)


def _choose_tm(n, d):
    """Pick a large, MXU-aligned row tile that fits a ~48 MiB VMEM budget
    (conservative for v7x's 64 MiB physical VMEM)."""
    budget = 48 * 1024 * 1024
    weight_bytes = 2 * d * d * 2 + 2 * d * 4          # bf16 weights + f32 biases
    act_budget = max(budget - weight_bytes, 4 * 1024 * 1024)
    max_rows = act_budget // (4 * d * 4)              # in+out tiles, double-buffered, f32
    if n <= max_rows and n <= 1024:
        return n                                      # whole problem, grid=(1,)
    tm = int(min(1024, max_rows))
    if tm >= 256:
        tm = (tm // 256) * 256                        # 256-aligned (v6e/v7x MXU, /128 for v5e)
    else:
        tm = max((tm // 8) * 8, 8)
    return tm


def _build_call(n_rows, d, tm, out_dtype, single_buffer_weights):
    grid = (n_rows // tm,)

    weight_kwargs = {}
    if single_buffer_weights:
        # Constant index_map -> operands are grid-resident; no double buffering.
        weight_kwargs = dict(pipeline_mode=pl.Buffered(1))

    in_specs = [
        pl.BlockSpec((tm, d), lambda i: (i, 0)),                   # activations tile
        pl.BlockSpec((d, d), lambda i: (0, 0), **weight_kwargs),   # W1 (resident, bf16)
        pl.BlockSpec((1, d), lambda i: (0, 0), **weight_kwargs),   # b1
        pl.BlockSpec((d, d), lambda i: (0, 0), **weight_kwargs),   # W2 (resident, bf16)
        pl.BlockSpec((1, d), lambda i: (0, 0), **weight_kwargs),   # b2
    ]
    out_specs = pl.BlockSpec((tm, d), lambda i: (i, 0))

    # VMEM sizing: bf16 weights (allow 2 buffers in case of the fallback path)
    # + f32 biases + double-buffered f32 in/out activation tiles + headroom.
    vmem_bytes = (2 * (2 * d * d * 2) + 2 * 2 * d * 4
                  + 2 * 2 * tm * d * 4 + (8 << 20))
    vmem_bytes = max(vmem_bytes, 32 * 1024 * 1024)
    vmem_bytes = min(vmem_bytes, 100 * 1024 * 1024)

    cost = pl.CostEstimate(
        flops=4 * n_rows * d * d,           # two (tm,d)x(d,d) matmuls
        transcendentals=2 * n_rows * d,     # two sigmoids
        bytes_accessed=2 * n_rows * d * 4 + 2 * d * d * 2 + 2 * d * 4,
    )

    return pl.pallas_call(
        _res_kernel,
        out_shape=jax.ShapeDtypeStruct((n_rows, d), out_dtype),
        grid_spec=pltpu.PrefetchScalarGridSpec(
            num_scalar_prefetch=0,
            grid=grid,
            in_specs=in_specs,
            out_specs=out_specs,
        ),
        compiler_params=pltpu.CompilerParams(
            dimension_semantics=("parallel",),
            vmem_limit_bytes=int(vmem_bytes),
        ),
        cost_estimate=cost,
    )


def res_forward(m, w1, b1, w2, b2, *, tm=None):
    """Res.forward: SiLU(SiLU(m@W1+b1)@W2+b2) + m.

    m: (N, D) float32. w1, w2: (D, D) stored as (in, out) (transposed vs.
    PyTorch's Linear.weight). b1, b2: (D,).
    """
    N, D = m.shape
    if tm is None:
        tm = _choose_tm(N, D)

    # Pad ragged N up to a tile multiple (rows are independent; padding is safe).
    n_pad = -(-N // tm) * tm
    m_in = m if n_pad == N else jnp.pad(m, ((0, n_pad - N), (0, 0)))

    # bf16 weights: full-rate MXU inputs, half the resident VMEM / HBM traffic.
    w1_bf = w1.astype(jnp.bfloat16)
    w2_bf = w2.astype(jnp.bfloat16)
    b1_2d = b1.reshape(1, D).astype(jnp.float32)
    b2_2d = b2.reshape(1, D).astype(jnp.float32)

    args = (m_in, w1_bf, b1_2d, w2_bf, b2_2d)
    try:
        out = _build_call(n_pad, D, tm, m.dtype, single_buffer_weights=True)(*args)
    except Exception:
        # Fallback if this JAX build rejects pl.Buffered(1) on resident operands.
        out = _build_call(n_pad, D, tm, m.dtype, single_buffer_weights=False)(*args)

    return out if n_pad == N else out[:N]


def _ref_forward(m, w1, b1, w2, b2):
    def _silu(x):
        return x * jax.nn.sigmoid(x)
    h = _silu(m @ w1 + b1)
    h2 = _silu(h @ w2 + b2)
    return h2 + m


if __name__ == "__main__":
    # Small shapes consistent with the module: m is (N, dim)
    N, DIM = 64, 128
    key = jax.random.PRNGKey(0)
    k_m, k_w1, k_b1, k_w2, k_b2 = jax.random.split(key, 5)

    m = jax.random.normal(k_m, (N, DIM), dtype=jnp.float32)

    # Deterministic parameter init (roughly PyTorch-Linear-like uniform scale).
    bound = 1.0 / (DIM ** 0.5)
    w1 = jax.random.uniform(k_w1, (DIM, DIM), jnp.float32, -bound, bound)
    b1 = jax.random.uniform(k_b1, (DIM,), jnp.float32, -bound, bound)
    w2 = jax.random.uniform(k_w2, (DIM, DIM), jnp.float32, -bound, bound)
    b2 = jax.random.uniform(k_b2, (DIM,), jnp.float32, -bound, bound)

    out = res_forward(m, w1, b1, w2, b2)
    out = jax.block_until_ready(out)

    # Correctness check against the pure-JAX (f32) reference of the PyTorch
    # module.  Tolerance is loosened because the kernel uses bf16 MXU inputs
    # with f32 accumulation.
    expected = _ref_forward(m, w1, b1, w2, b2)
    assert out.shape == (N, DIM)
    assert jnp.allclose(out, expected, atol=2e-2, rtol=2e-2), "mismatch vs reference"

    print("KERNEL_OK")
</pallas_src>

<mosaic_0001>
module attributes {stable_mosaic.version = 11 : i64} {
  func.func @_res_kernel(%arg0: i32, %arg1: memref<64x128xf32, #tpu.memory_space<vmem>>, %arg2: memref<128x128xbf16, #tpu.memory_space<vmem>>, %arg3: memref<1x128xf32, #tpu.memory_space<vmem>>, %arg4: memref<128x128xbf16, #tpu.memory_space<vmem>>, %arg5: memref<1x128xf32, #tpu.memory_space<vmem>>, %arg6: memref<64x128xf32, #tpu.memory_space<vmem>>) attributes {dimension_semantics = [#tpu.dimension_semantics<parallel>], iteration_bounds = array<i64: 1>, scalar_prefetch = 0 : i64, scratch_operands = 0 : i64, tpu.core_type = #tpu.core_type<tc>, window_params = [{transform_indices = @transform_0, window_bounds = array<i64: 64, 128>}, {pipeline_mode = #tpu.pipeline_mode<synchronous>, transform_indices = @transform_1, window_bounds = array<i64: 128, 128>}, {pipeline_mode = #tpu.pipeline_mode<synchronous>, transform_indices = @transform_2, window_bounds = array<i64: 1, 128>}, {pipeline_mode = #tpu.pipeline_mode<synchronous>, transform_indices = @transform_3, window_bounds = array<i64: 128, 128>}, {pipeline_mode = #tpu.pipeline_mode<synchronous>, transform_indices = @transform_4, window_bounds = array<i64: 1, 128>}, {transform_indices = @transform_5, window_bounds = array<i64: 64, 128>}]} {
    %c0 = arith.constant 0 : index
    %c0_0 = arith.constant 0 : index
    %0 = vector.load %arg1[%c0, %c0_0] : memref<64x128xf32, #tpu.memory_space<vmem>>, vector<64x128xf32>
    %c0_1 = arith.constant 0 : index
    %c0_2 = arith.constant 0 : index
    %1 = vector.load %arg3[%c0_1, %c0_2] : memref<1x128xf32, #tpu.memory_space<vmem>>, vector<1x128xf32>
    %c0_3 = arith.constant 0 : index
    %c0_4 = arith.constant 0 : index
    %2 = vector.load %arg5[%c0_3, %c0_4] : memref<1x128xf32, #tpu.memory_space<vmem>>, vector<1x128xf32>
    %3 = arith.truncf %0 : vector<64x128xf32> to vector<64x128xbf16>
    %c0_5 = arith.constant 0 : index
    %c0_6 = arith.constant 0 : index
    %4 = vector.load %arg2[%c0_5, %c0_6] : memref<128x128xbf16, #tpu.memory_space<vmem>>, vector<128x128xbf16>
    %cst = arith.constant dense<0.000000e+00> : vector<64x128xf32>
    %5 = tpu.matmul %3, %4, %cst {dimension_numbers = #tpu.dot_dimension_numbers<[1], [0], [0], [1], [0, 0, 1, 1], [], []>} : vector<64x128xbf16>, vector<128x128xbf16>, vector<64x128xf32> -> vector<64x128xf32>
    %6 = vector.broadcast %1 : vector<1x128xf32> to vector<64x128xf32>
    %7 = arith.addf %5, %6 : vector<64x128xf32>
    %8 = arith.negf %7 : vector<64x128xf32>
    %9 = math.exp %8 : vector<64x128xf32>
    %cst_7 = arith.constant 1.000000e+00 : f32
    %10 = vector.broadcast %cst_7 : f32 to vector<64x128xf32>
    %11 = arith.addf %10, %9 : vector<64x128xf32>
    %12 = arith.divf %10, %11 : vector<64x128xf32>
    %13 = arith.mulf %7, %12 : vector<64x128xf32>
    %14 = arith.truncf %13 : vector<64x128xf32> to vector<64x128xbf16>
    %c0_8 = arith.constant 0 : index
    %c0_9 = arith.constant 0 : index
    %15 = vector.load %arg4[%c0_8, %c0_9] : memref<128x128xbf16, #tpu.memory_space<vmem>>, vector<128x128xbf16>
    %cst_10 = arith.constant dense<0.000000e+00> : vector<64x128xf32>
    %16 = tpu.matmul %14, %15, %cst_10 {dimension_numbers = #tpu.dot_dimension_numbers<[1], [0], [0], [1], [0, 0, 1, 1], [], []>} : vector<64x128xbf16>, vector<128x128xbf16>, vector<64x128xf32> -> vector<64x128xf32>
    %17 = vector.broadcast %2 : vector<1x128xf32> to vector<64x128xf32>
    %18 = arith.addf %16, %17 : vector<64x128xf32>
    %19 = arith.negf %18 : vector<64x128xf32>
    %20 = math.exp %19 : vector<64x128xf32>
    %cst_11 = arith.constant 1.000000e+00 : f32
    %21 = vector.broadcast %cst_11 : f32 to vector<64x128xf32>
    %22 = arith.addf %21, %20 : vector<64x128xf32>
    %23 = arith.divf %21, %22 : vector<64x128xf32>
    %24 = arith.mulf %18, %23 : vector<64x128xf32>
    %25 = arith.addf %24, %0 : vector<64x128xf32>
    %c0_12 = arith.constant 0 : index
    %c0_13 = arith.constant 0 : index
    %26 = vector.load %arg6[%c0_12, %c0_13] : memref<64x128xf32, #tpu.memory_space<vmem>>, vector<64x128xf32>
    tpu.vector_store %arg6[%c0_12, %c0_13], %25 {strides = array<i32>} : memref<64x128xf32, #tpu.memory_space<vmem>>, vector<64x128xf32>,
    return
  }
  func.func @transform_0(%arg0: i32) -> (i32, i32) {
    %c0_i32 = arith.constant 0 : i32
    %c0_i32_0 = arith.constant 0 : i32
    return %arg0, %c0_i32 : i32, i32
  }
  func.func @transform_1(%arg0: i32) -> (i32, i32) {
    %c0_i32 = arith.constant 0 : i32
    %c0_i32_0 = arith.constant 0 : i32
    %c0_i32_1 = arith.constant 0 : i32
    return %c0_i32, %c0_i32_0 : i32, i32
  }
  func.func @transform_2(%arg0: i32) -> (i32, i32) {
    %c0_i32 = arith.constant 0 : i32
    %c0_i32_0 = arith.constant 0 : i32
    %c0_i32_1 = arith.constant 0 : i32
    return %c0_i32, %c0_i32_0 : i32, i32
  }
  func.func @transform_3(%arg0: i32) -> (i32, i32) {
    %c0_i32 = arith.constant 0 : i32
    %c0_i32_0 = arith.constant 0 : i32
    %c0_i32_1 = arith.constant 0 : i32
    return %c0_i32, %c0_i32_0 : i32, i32
  }
  func.func @transform_4(%arg0: i32) -> (i32, i32) {
    %c0_i32 = arith.constant 0 : i32
    %c0_i32_0 = arith.constant 0 : i32
    %c0_i32_1 = arith.constant 0 : i32
    return %c0_i32, %c0_i32_0 : i32, i32
  }
  func.func @transform_5(%arg0: i32) -> (i32, i32) {
    %c0_i32 = arith.constant 0 : i32
    %c0_i32_0 = arith.constant 0 : i32
    return %arg0, %c0_i32 : i32, i32
  }
}

module attributes {stable_mosaic.version = 11 : i64} {
  func.func @_res_kernel(%arg0: i32, %arg1: memref<64x128xf32, #tpu.memory_space<vmem>>, %arg2: memref<128x128xbf16, #tpu.memory_space<vmem>>, %arg3: memref<1x128xf32, #tpu.memory_space<vmem>>, %arg4: memref<128x128xbf16, #tpu.memory_space<vmem>>, %arg5: memref<1x128xf32, #tpu.memory_space<vmem>>, %arg6: memref<64x128xf32, #tpu.memory_space<vmem>>) attributes {dimension_semantics = [#tpu.dimension_semantics<parallel>], iteration_bounds = array<i64: 1>, scalar_prefetch = 0 : i64, scratch_operands = 0 : i64, tpu.core_type = #tpu.core_type<tc>, window_params = [{transform_indices = @transform_0, window_bounds = array<i64: 64, 128>}, {pipeline_mode = #tpu.pipeline_mode<synchronous>, transform_indices = @transform_1, window_bounds = array<i64: 128, 128>}, {pipeline_mode = #tpu.pipeline_mode<synchronous>, transform_indices = @transform_2, window_bounds = array<i64: 1, 128>}, {pipeline_mode = #tpu.pipeline_mode<synchronous>, transform_indices = @transform_3, window_bounds = array<i64: 128, 128>}, {pipeline_mode = #tpu.pipeline_mode<synchronous>, transform_indices = @transform_4, window_bounds = array<i64: 1, 128>}, {transform_indices = @transform_5, window_bounds = array<i64: 64, 128>}]} {
    %c0 = arith.constant 0 : index
    %c0_0 = arith.constant 0 : index
    %0 = vector.load %arg1[%c0, %c0_0] : memref<64x128xf32, #tpu.memory_space<vmem>>, vector<64x128xf32>
    %c0_1 = arith.constant 0 : index
    %c0_2 = arith.constant 0 : index
    %1 = vector.load %arg3[%c0_1, %c0_2] : memref<1x128xf32, #tpu.memory_space<vmem>>, vector<1x128xf32>
    %c0_3 = arith.constant 0 : index
    %c0_4 = arith.constant 0 : index
    %2 = vector.load %arg5[%c0_3, %c0_4] : memref<1x128xf32, #tpu.memory_space<vmem>>, vector<1x128xf32>
    %3 = arith.truncf %0 : vector<64x128xf32> to vector<64x128xbf16>
    %c0_5 = arith.constant 0 : index
    %c0_6 = arith.constant 0 : index
    %4 = vector.load %arg2[%c0_5, %c0_6] : memref<128x128xbf16, #tpu.memory_space<vmem>>, vector<128x128xbf16>
    %cst = arith.constant dense<0.000000e+00> : vector<64x128xf32>
    %5 = tpu.matmul %3, %4, %cst {dimension_numbers = #tpu.dot_dimension_numbers<[1], [0], [0], [1], [0, 0, 1, 1], [], []>} : vector<64x128xbf16>, vector<128x128xbf16>, vector<64x128xf32> -> vector<64x128xf32>
    %6 = vector.broadcast %1 : vector<1x128xf32> to vector<64x128xf32>
    %7 = arith.addf %5, %6 : vector<64x128xf32>
    %8 = arith.negf %7 : vector<64x128xf32>
    %9 = math.exp %8 : vector<64x128xf32>
    %cst_7 = arith.constant 1.000000e+00 : f32
    %10 = vector.broadcast %cst_7 : f32 to vector<64x128xf32>
    %11 = arith.addf %10, %9 : vector<64x128xf32>
    %12 = arith.divf %10, %11 : vector<64x128xf32>
    %13 = arith.mulf %7, %12 : vector<64x128xf32>
    %14 = arith.truncf %13 : vector<64x128xf32> to vector<64x128xbf16>
    %c0_8 = arith.constant 0 : index
    %c0_9 = arith.constant 0 : index
    %15 = vector.load %arg4[%c0_8, %c0_9] : memref<128x128xbf16, #tpu.memory_space<vmem>>, vector<128x128xbf16>
    %cst_10 = arith.constant dense<0.000000e+00> : vector<64x128xf32>
    %16 = tpu.matmul %14, %15, %cst_10 {dimension_numbers = #tpu.dot_dimension_numbers<[1], [0], [0], [1], [0, 0, 1, 1], [], []>} : vector<64x128xbf16>, vector<128x128xbf16>, vector<64x128xf32> -> vector<64x128xf32>
    %17 = vector.broadcast %2 : vector<1x128xf32> to vector<64x128xf32>
    %18 = arith.addf %16, %17 : vector<64x128xf32>
    %19 = arith.negf %18 : vector<64x128xf32>
    %20 = math.exp %19 : vector<64x128xf32>
    %cst_11 = arith.constant 1.000000e+00 : f32
    %21 = vector.broadcast %cst_11 : f32 to vector<64x128xf32>
    %22 = arith.addf %21, %20 : vector<64x128xf32>
    %23 = arith.divf %21, %22 : vector<64x128xf32>
    %24 = arith.mulf %18, %23 : vector<64x128xf32>
    %25 = arith.addf %24, %0 : vector<64x128xf32>
    %c0_12 = arith.constant 0 : index
    %c0_13 = arith.constant 0 : index
    %26 = vector.load %arg6[%c0_12, %c0_13] : memref<64x128xf32, #tpu.memory_space<vmem>>, vector<64x128xf32>
    tpu.vector_store %arg6[%c0_12, %c0_13], %25 {strides = array<i32>} : memref<64x128xf32, #tpu.memory_space<vmem>>, vector<64x128xf32>,
    return
  }
  func.func @transform_0(%arg0: i32) -> (i32, i32) {
    %c0_i32 = arith.constant 0 : i32
    %c0_i32_0 = arith.constant 0 : i32
    return %arg0, %c0_i32 : i32, i32
  }
  func.func @transform_1(%arg0: i32) -> (i32, i32) {
    %c0_i32 = arith.constant 0 : i32
    %c0_i32_0 = arith.constant 0 : i32
    %c0_i32_1 = arith.constant 0 : i32
    return %c0_i32, %c0_i32_0 : i32, i32
  }
  func.func @transform_2(%arg0: i32) -> (i32, i32) {
    %c0_i32 = arith.constant 0 : i32
    %c0_i32_0 = arith.constant 0 : i32
    %c0_i32_1 = arith.constant 0 : i32
    return %c0_i32, %c0_i32_0 : i32, i32
  }
  func.func @transform_3(%arg0: i32) -> (i32, i32) {
    %c0_i32 = arith.constant 0 : i32
    %c0_i32_0 = arith.constant 0 : i32
    %c0_i32_1 = arith.constant 0 : i32
    return %c0_i32, %c0_i32_0 : i32, i32
  }
  func.func @transform_4(%arg0: i32) -> (i32, i32) {
    %c0_i32 = arith.constant 0 : i32
    %c0_i32_0 = arith.constant 0 : i32
    %c0_i32_1 = arith.constant 0 : i32
    return %c0_i32, %c0_i32_0 : i32, i32
  }
  func.func @transform_5(%arg0: i32) -> (i32, i32) {
    %c0_i32 = arith.constant 0 : i32
    %c0_i32_0 = arith.constant 0 : i32
    return %arg0, %c0_i32 : i32, i32
  }
}

</mosaic_0001>

<bundles_post_ra>
// kernel: tpu_custom_call.1
= control target key start
LH: loop header
LB: loop body
LE: loop exit
PB: predicated region body
PF: predicated region fallthrough
CT: control target
= control target key end

     0   :  { %10 = vsyncpa [#allocation3], 0  ;;  %s921_s0 = inlined_call_operand.hbm [shape: f32[64,128], index: 0, kind: input, shape index: {}]   ;;  %s922_s1 = inlined_call_operand.hbm [shape: bf16[128,128], index: 1, kind: input, shape index: {}]   ;;  %s923_s2 = inlined_call_operand.vmem [shape: f32[1,128], index: 2, kind: input, shape index: {}]   ;;  %s924_s3 = inlined_call_operand.hbm [shape: bf16[128,128], index: 3, kind: input, shape index: {}]   ;;  %s925_s4 = inlined_call_operand.vmem [shape: f32[1,128], index: 4, kind: input, shape index: {}]   ;;  %s926_s5 = inlined_call_operand.hbm [shape: f32[64,128], index: 5, kind: output, shape index: {}]  }
   0x1   :  { %11 = vsyncpa [#allocation6], 0 }
   0x2   :  { %12 = vsyncpa [#allocation4], 0  ;;  %s785_s18 = smov [#allocation5]   ;;  %s691_s22 = scalar_lea.hbm %s922_s1, 1024 }
   0x3   :  { %s30_s19 = sshll.u32 %s785_s18, 4  ;;  %p692_p0 = scmp.ne.s32.totalorder %s922_s1, %s691_s22  ;;  %s31_s19 = int_to_ptr.vmem [resolvable:$true] %s30_s19 }
   0x4   :  { %p695_p1 = scmp.lt.u32.totalorder %s691_s22, %s922_s1 }
   0x6   :  { %p697_p2 = pnand %p695_p1, %p692_p0 }
   0x8   :  { %700 = shalt.err (!%p697_p2)
}
   0x9   :  { %s701_s27 = scalar_lea.vmem %s31_s19, 1024  ;;  %p706_p4 = scmp.lt.s32.totalorder %s31_s19, %s31_s19 }
   0xa   :  { %p702_p3 = scmp.ne.s32.totalorder %s31_s19, %s701_s27  ;;  %p707_p5 = scmp.lt.s32.totalorder %s701_s27, %s701_s27 }
   0xc   :  { %p708_p6 = por %p707_p5, %p706_p4 }
   0xe   :  { %p709_p7 = pnand %p708_p6, %p702_p3 }
  0x10   :  { %712 = shalt.err (!%p709_p7)
}
  0x11   :  { %s786_s28 = smov 64   ;;  %s787_s29 = smov 4  }
  0x12   :  { %36 = dma.hbm_to_vmem [thread:$0]  %s922_s1, 1024, %s31_s19, [#allocation6], %s786_s28, %s786_s28, %s787_s29  }
  0x13   :  { %s788_s7 = smov [#allocation2]   ;;  %s713_s11 = scalar_lea.hbm %s921_s0, 1024 }
  0x14   :  { %s18_s8 = sshll.u32 %s788_s7, 4  ;;  %p714_p8 = scmp.ne.s32.totalorder %s921_s0, %s713_s11  ;;  %s19_s8 = int_to_ptr.vmem [resolvable:$true] %s18_s8 }
  0x15   :  { %p717_p9 = scmp.lt.u32.totalorder %s713_s11, %s921_s0 }
  0x17   :  { %p719_p10 = pnand %p717_p9, %p714_p8 }
  0x19   :  { %722 = shalt.err (!%p719_p10)
}
  0x1a   :  { %s723_s16 = scalar_lea.vmem %s19_s8, 1024  ;;  %p728_p12 = scmp.lt.s32.totalorder %s19_s8, %s19_s8 }
  0x1b   :  { %p724_p11 = scmp.ne.s32.totalorder %s19_s8, %s723_s16  ;;  %p729_p13 = scmp.lt.s32.totalorder %s723_s16, %s723_s16 }
  0x1d   :  { %p730_p0 = por %p729_p13, %p728_p12 }
  0x1f   :  { %p731_p1 = pnand %p730_p0, %p724_p11 }
  0x21   :  { %734 = shalt.err (!%p731_p1)
}
  0x22   :  { %s789_s1 = smov 128   ;;  %s790_s17 = smov 8  }
  0x23   :  { %24 = dma.hbm_to_vmem [thread:$0]  %s921_s0, 1024, %s19_s8, [#allocation3], %s789_s1, %s789_s1, %s790_s17  }
  0x24   :  { %s791_s20 = smov [#allocation7]   ;;  %s735_s24 = scalar_lea.hbm %s924_s3, 1024 }
  0x25   :  { %s44_s21 = sshll.u32 %s791_s20, 4  ;;  %p736_p2 = scmp.ne.s32.totalorder %s924_s3, %s735_s24  ;;  %s45_s21 = int_to_ptr.vmem [resolvable:$true] %s44_s21 }
  0x26   :  { %p739_p3 = scmp.lt.u32.totalorder %s735_s24, %s924_s3 }
  0x28   :  { %p741_p4 = pnand %p739_p3, %p736_p2 }
  0x2a   :  { %744 = shalt.err (!%p741_p4)
}
  0x2b   :  { %s745_s6 = scalar_lea.vmem %s45_s21, 1024  ;;  %p750_p6 = scmp.lt.s32.totalorder %s45_s21, %s45_s21 }
  0x2c   :  { %p746_p5 = scmp.ne.s32.totalorder %s45_s21, %s745_s6  ;;  %p751_p7 = scmp.lt.s32.totalorder %s745_s6, %s745_s6 }
  0x2e   :  { %p752_p8 = por %p751_p7, %p750_p6 }
  0x30   :  { %p753_p9 = pnand %p752_p8, %p746_p5 }
  0x32   :  { %756 = shalt.err (!%p753_p9)
}
  0x33   :  { %50 = dma.hbm_to_vmem [thread:$0]  %s924_s3, 1024, %s45_s21, [#allocation6], %s786_s28, %s786_s28, %s787_s29  }
  0x34   :  { %779 = dma.done.wait [#allocation3], 1024  }
  0x35   :  { %780 = vsyncadd [#allocation3], 4294966272 }
  0x36   :  { %781 = dma.done.wait [#allocation6], 2048  }
  0x37   :  { %782 = vsyncadd [#allocation6], 4294965248  ;;  %v611_v0 = vld [vmem:[#allocation5] sm:$0xff]   ;;  %v612_v1 = vld [vmem:[#allocation5 + $0x8] sm:$0xff]  }
  0x38   :  { %555 = vmatprep.subr.bf16.mxu0 %v611_v0  ;;  %v613_v2 = vld [vmem:[#allocation5 + $0x10] sm:$0xff]   ;;  %v614_v3 = vld [vmem:[#allocation5 + $0x18] sm:$0xff]   ;;  %v868_v4 = vld [vmem:[#allocation2] sm:$0xff] }
  0x39   :  { %556 = vmatpush3.bf16.msra.mxu0 %v611_v0  ;;  %v870_v5 = vld [vmem:[#allocation2 + $0x8] sm:$0xff]  ;;  %v615_v7 = vld [vmem:[#allocation5 + $0x20] sm:$0xff]   ;;  %v617_v9 = vld [vmem:[#allocation5 + $0x30] sm:$0xff]  }
  0x3a   :  { %557 = vmatprep.subr.bf16.mxu0 %v612_v1  ;;  %v73_v6 = vpack.c.bf16 %v870_v5, %v868_v4  ;;  %v616_v8 = vld [vmem:[#allocation5 + $0x28] sm:$0xff]   ;;  %v618_v10 = vld [vmem:[#allocation5 + $0x38] sm:$0xff]   ;;  %v874_v11 = vld [vmem:[#allocation2 + $0x10] sm:$0xff] }
  0x3b   :  { %v876_v12 = vld [vmem:[#allocation2 + $0x18] sm:$0xff]  ;;  %v878_v13 = vld [vmem:[#allocation2 + $0x20] sm:$0xff]  ;;  %v880_v14 = vld [vmem:[#allocation2 + $0x28] sm:$0xff] }
  0x3c   :  { %571 = vmatprep.mubr.bf16.mxu0 %v73_v6  ;;  %v74_v15 = vpack.c.bf16 %v876_v12, %v874_v11  ;;  %v75_v16 = vpack.c.bf16 %v880_v14, %v878_v13  ;;  %v886_v17 = vld [vmem:[#allocation2 + $0x30] sm:$0xff]  ;;  %v888_v18 = vld [vmem:[#allocation2 + $0x38] sm:$0xff]  ;;  %v619_v20 = vld [vmem:[#allocation7] sm:$0xff]  }
  0x3d   :  { %558 = vmatpush3.bf16.msra.mxu0 %v612_v1  ;;  %v76_v19 = vpack.c.bf16 %v888_v18, %v886_v17  ;;  %579 = vmatprep.subr.bf16.mxu1 %v619_v20  ;;  %v620_v21 = vld [vmem:[#allocation7 + $0x8] sm:$0xff]   ;;  %v621_v22 = vld [vmem:[#allocation7 + $0x10] sm:$0xff]   ;;  %v622_v23 = vld [vmem:[#allocation7 + $0x18] sm:$0xff]  }
  0x3e   :  { %559 = vmatprep.subr.bf16.mxu0 %v613_v2  ;;  %580 = vmatpush3.bf16.msra.mxu1 %v619_v20  ;;  %v623_v24 = vld [vmem:[#allocation7 + $0x20] sm:$0xff]   ;;  %v624_v25 = vld [vmem:[#allocation7 + $0x28] sm:$0xff]   ;;  %v625_v26 = vld [vmem:[#allocation7 + $0x30] sm:$0xff]  }
  0x3f   :  { %581 = vmatprep.subr.bf16.mxu1 %v620_v21  ;;  %v626_v27 = vld [vmem:[#allocation7 + $0x38] sm:$0xff]   ;;  %v497_v28 = vld [vmem:[%s923_s2] ss:$0 sm:$0xff] }
  0x41   :  { %560 = vmatpush3.bf16.msra.mxu0 %v613_v2 }
  0x42   :  { %561 = vmatprep.subr.bf16.mxu0 %v614_v3  ;;  %582 = vmatpush3.bf16.msra.mxu1 %v620_v21 }
  0x43   :  { %583 = vmatprep.subr.bf16.mxu1 %v621_v22 }
  0x45   :  { %562 = vmatpush3.bf16.msra.mxu0 %v614_v3 }
  0x46   :  { %563 = vmatprep.subr.bf16.mxu0 %v615_v7  ;;  %584 = vmatpush3.bf16.msra.mxu1 %v621_v22 }
  0x47   :  { %585 = vmatprep.subr.bf16.mxu1 %v622_v23 }
  0x49   :  { %564 = vmatpush3.bf16.msra.mxu0 %v615_v7 }
  0x4a   :  { %565 = vmatprep.subr.bf16.mxu0 %v616_v8  ;;  %586 = vmatpush3.bf16.msra.mxu1 %v622_v23 }
  0x4b   :  { %587 = vmatprep.subr.bf16.mxu1 %v623_v24 }
  0x4d   :  { %566 = vmatpush3.bf16.msra.mxu0 %v616_v8 }
  0x4e   :  { %567 = vmatprep.subr.bf16.mxu0 %v617_v9  ;;  %588 = vmatpush3.bf16.msra.mxu1 %v623_v24 }
  0x4f   :  { %589 = vmatprep.subr.bf16.mxu1 %v624_v25 }
  0x51   :  { %568 = vmatpush3.bf16.msra.mxu0 %v617_v9 }
  0x52   :  { %569 = vmatprep.subr.bf16.mxu0 %v618_v10  ;;  %590 = vmatpush3.bf16.msra.mxu1 %v624_v25 }
  0x53   :  { %591 = vmatprep.subr.bf16.mxu1 %v625_v26 }
  0x55   :  { %570 = vmatpush3.bf16.msra.mxu0 %v618_v10 }
  0x56   :  { %592 = vmatpush3.bf16.msra.mxu1 %v625_v26 }
  0x57   :  { %593 = vmatprep.subr.bf16.mxu1 %v626_v27 }
  0x58   :  { %572 = vmatmul.mubr.bf16.vlgmr.msra.gmra.mrb[0].mxu0 %v74_v15 }
  0x59   :  { %575 = vmatprep.mubr.bf16.mxu0 %v75_v16 }
  0x5a   :  { %594 = vmatpush3.bf16.msra.mxu1 %v626_v27 }
  0x60   :  { %576 = vmatmul.mubr.bf16.gmra.mrb[4].mxu0 %v76_v19 }
 0x12b   :  { %v573_v29 = vpop.f32.mrb[0].mxu0 }
 0x12c   :  { %v190_v30 = vadd.f32 %v573_v29, %v497_v28  ;;  %v181_v31 = vpop.f32.mrb[1].mxu0 }
 0x12d   :  { %v182_v32 = vadd.f32 %v497_v28, %v181_v31  ;;  %v574_v33 = vpop.f32.mrb[2].mxu0 }
 0x12e   :  { %v508_v34 = vmul.f32 -1.442695, %v190_v30  ;;  %v193_v35 = vadd.f32 %v574_v33, %v497_v28  ;;  %v184_v36 = vpop.f32.mrb[3].mxu0 }
 0x12f   :  { %v506_v37 = vmul.f32 -1.442695, %v182_v32  ;;  %v185_v38 = vadd.f32 %v497_v28, %v184_v36 }
 0x130   :  { %627 = vpow2.f32 %v508_v34  ;;  %v509_v39 = vmul.f32 -1.442695, %v193_v35 }
 0x131   :  { %629 = vpow2.f32 %v506_v37  ;;  %v507_v40 = vmul.f32 -1.442695, %v185_v38 }
 0x132   :  { %631 = vpow2.f32 %v509_v39 }
 0x133   :  { %633 = vpow2.f32 %v507_v40  ;;  %v577_v41 = vpop.f32.mrb[4].mxu0 }
 0x134   :  { %v206_v42 = vadd.f32 %v577_v41, %v497_v28  ;;  %v197_v43 = vpop.f32.mrb[5].mxu0 }
 0x135   :  { %v198_v44 = vadd.f32 %v497_v28, %v197_v43  ;;  %v578_v45 = vpop.f32.mrb[6].mxu0 }
 0x136   :  { %v512_v46 = vmul.f32 -1.442695, %v206_v42  ;;  %v209_v47 = vadd.f32 %v578_v45, %v497_v28  ;;  %v200_v48 = vpop.f32.mrb[7].mxu0 }
 0x137   :  { %v510_v49 = vmul.f32 -1.442695, %v198_v44  ;;  %v201_v50 = vadd.f32 %v497_v28, %v200_v48 }
 0x138   :  { %635 = vpow2.f32 %v512_v46  ;;  %v513_v51 = vmul.f32 -1.442695, %v209_v47 }
 0x139   :  { %637 = vpow2.f32 %v510_v49  ;;  %v511_v52 = vmul.f32 -1.442695, %v201_v50 }
 0x13a   :  { %v628_v53 = vpop.eup %627  ;;  %639 = vpow2.f32 %v513_v51 }
 0x13b   :  { %v630_v54 = vpop.eup %629  ;;  %v238_v55 = vadd.f32 1.0, %v628_v53  ;;  %641 = vpow2.f32 %v511_v52 }
 0x13c   :  { %v632_v56 = vpop.eup %631  ;;  %v236_v57 = vadd.f32 1.0, %v630_v54 }
 0x13d   :  { %v634_v58 = vpop.eup %633  ;;  %643 = vrcp.f32 %v238_v55  ;;  %v239_v59 = vadd.f32 1.0, %v632_v56 }
 0x13e   :  { %645 = vrcp.f32 %v236_v57  ;;  %v237_v60 = vadd.f32 1.0, %v634_v58 }
 0x13f   :  { %647 = vrcp.f32 %v239_v59 }
 0x140   :  { %649 = vrcp.f32 %v237_v60 }
 0x142   :  { %v636_v61 = vpop.eup %635 }
 0x143   :  { %v638_v62 = vpop.eup %637  ;;  %v242_v63 = vadd.f32 1.0, %v636_v61 }
 0x144   :  { %v640_v0 = vpop.eup %639  ;;  %v240_v1 = vadd.f32 1.0, %v638_v62 }
 0x145   :  { %v642_v2 = vpop.eup %641  ;;  %651 = vrcp.f32 %v242_v63  ;;  %v243_v3 = vadd.f32 1.0, %v640_v0 }
 0x146   :  { %653 = vrcp.f32 %v240_v1  ;;  %v241_v6 = vadd.f32 1.0, %v642_v2 }
 0x147   :  { %v644_v7 = vpop.eup %643  ;;  %655 = vrcp.f32 %v243_v3 }
 0x148   :  { %v646_v8 = vpop.eup %645  ;;  %657 = vrcp.f32 %v241_v6  ;;  %v262_v15 = vmul.f32 %v644_v7, %v190_v30  ;;  %v514_v30 = vld [vmem:[%s925_s4] ss:$0 sm:$0xff]  ;;  %s792_s4 = smov [#allocation8]  }
 0x149   :  { %v648_v9 = vpop.eup %647  ;;  %v260_v19 = vmul.f32 %v646_v8, %v182_v32  ;;  %s484_s8 = sshll.u32 %s792_s4, 4  ;;  %s485_s8 = int_to_ptr.vmem [resolvable:$true] %s484_s8 }
 0x14a   :  { %v650_v10 = vpop.eup %649  ;;  %v263_v16 = vmul.f32 %v648_v9, %v193_v35  ;;  %s757_s9 = scalar_lea.vmem %s485_s8, 1024  ;;  %p762_p11 = scmp.lt.s32.totalorder %s485_s8, %s485_s8 }
 0x14b   :  { %v261_v20 = vmul.f32 %v650_v10, %v185_v38  ;;  %p758_p10 = scmp.ne.s32.totalorder %s485_s8, %s757_s9  ;;  %p763_p12 = scmp.lt.s32.totalorder %s757_s9, %s757_s9 }
 0x14c   :  { %v269_v21 = vpack.c.bf16 %v263_v16, %v262_v15 }
 0x14d   :  { %v268_v22 = vpack.c.bf16 %v261_v20, %v260_v19  ;;  %p764_p13 = por %p763_p12, %p762_p11 }
 0x14f   :  { %v652_v23 = vpop.eup %651  ;;  %595 = vmatprep.mubr.bf16.mxu1 %v268_v22  ;;  %p765_p0 = pnand %p764_p13, %p758_p10 }
 0x150   :  { %v654_v24 = vpop.eup %653  ;;  %596 = vmatmul.mubr.bf16.vlgmr.msra.gmra.mrb[0].mxu1 %v269_v21  ;;  %v266_v27 = vmul.f32 %v652_v23, %v206_v42 }
 0x151   :  { %v656_v25 = vpop.eup %655  ;;  %v264_v29 = vmul.f32 %v654_v24, %v198_v44 }
 0x152   :  { %v658_v26 = vpop.eup %657  ;;  %v267_v28 = vmul.f32 %v656_v25, %v209_v47 }
 0x153   :  { %v265_v31 = vmul.f32 %v658_v26, %v201_v50 }
 0x154   :  { %v271_v33 = vpack.c.bf16 %v267_v28, %v266_v27 }
 0x155   :  { %v270_v34 = vpack.c.bf16 %v265_v31, %v264_v29 }
 0x157   :  { %599 = vmatprep.mubr.bf16.mxu1 %v270_v34 }
 0x158   :  { %600 = vmatmul.mubr.bf16.gmra.mrb[4].mxu1 %v271_v33 }
 0x223   :  { %v597_v32 = vpop.f32.mrb[0].mxu1 }
 0x224   :  { %v385_v35 = vadd.f32 %v597_v32, %v514_v30  ;;  %v376_v36 = vpop.f32.mrb[1].mxu1 }
 0x225   :  { %v377_v37 = vadd.f32 %v514_v30, %v376_v36  ;;  %v598_v38 = vpop.f32.mrb[2].mxu1 }
 0x226   :  { %v525_v39 = vmul.f32 -1.442695, %v385_v35  ;;  %v388_v40 = vadd.f32 %v598_v38, %v514_v30  ;;  %v379_v41 = vpop.f32.mrb[3].mxu1 }
 0x227   :  { %v523_v42 = vmul.f32 -1.442695, %v377_v37  ;;  %v380_v43 = vadd.f32 %v514_v30, %v379_v41 }
 0x228   :  { %659 = vpow2.f32 %v525_v39  ;;  %v526_v44 = vmul.f32 -1.442695, %v388_v40 }
 0x229   :  { %661 = vpow2.f32 %v523_v42  ;;  %v524_v45 = vmul.f32 -1.442695, %v380_v43 }
 0x22a   :  { %663 = vpow2.f32 %v526_v44 }
 0x22b   :  { %665 = vpow2.f32 %v524_v45  ;;  %v601_v46 = vpop.f32.mrb[4].mxu1 }
 0x22c   :  { %v401_v47 = vadd.f32 %v601_v46, %v514_v30  ;;  %v392_v48 = vpop.f32.mrb[5].mxu1 }
 0x22d   :  { %v393_v49 = vadd.f32 %v514_v30, %v392_v48  ;;  %v602_v50 = vpop.f32.mrb[6].mxu1 }
 0x22e   :  { %v529_v51 = vmul.f32 -1.442695, %v401_v47  ;;  %v404_v52 = vadd.f32 %v602_v50, %v514_v30  ;;  %v395_v53 = vpop.f32.mrb[7].mxu1 }
 0x22f   :  { %v527_v54 = vmul.f32 -1.442695, %v393_v49  ;;  %v396_v55 = vadd.f32 %v514_v30, %v395_v53 }
 0x230   :  { %667 = vpow2.f32 %v529_v51  ;;  %v530_v56 = vmul.f32 -1.442695, %v404_v52 }
 0x231   :  { %669 = vpow2.f32 %v527_v54  ;;  %v528_v57 = vmul.f32 -1.442695, %v396_v55 }
 0x232   :  { %v660_v58 = vpop.eup %659  ;;  %671 = vpow2.f32 %v530_v56 }
 0x233   :  { %v662_v59 = vpop.eup %661  ;;  %v433_v60 = vadd.f32 1.0, %v660_v58  ;;  %673 = vpow2.f32 %v528_v57 }
 0x234   :  { %v664_v61 = vpop.eup %663  ;;  %v431_v62 = vadd.f32 1.0, %v662_v59 }
 0x235   :  { %v666_v63 = vpop.eup %665  ;;  %675 = vrcp.f32 %v433_v60  ;;  %v434_v0 = vadd.f32 1.0, %v664_v61 }
 0x236   :  { %677 = vrcp.f32 %v431_v62  ;;  %v432_v1 = vadd.f32 1.0, %v666_v63 }
 0x237   :  { %679 = vrcp.f32 %v434_v0 }
 0x238   :  { %681 = vrcp.f32 %v432_v1 }
 0x23a   :  { %v668_v2 = vpop.eup %667 }
 0x23b   :  { %v670_v3 = vpop.eup %669  ;;  %v437_v6 = vadd.f32 1.0, %v668_v2 }
 0x23c   :  { %v672_v7 = vpop.eup %671  ;;  %v435_v8 = vadd.f32 1.0, %v670_v3 }
 0x23d   :  { %v674_v9 = vpop.eup %673  ;;  %683 = vrcp.f32 %v437_v6  ;;  %v438_v10 = vadd.f32 1.0, %v672_v7 }
 0x23e   :  { %685 = vrcp.f32 %v435_v8  ;;  %v436_v15 = vadd.f32 1.0, %v674_v9 }
 0x23f   :  { %v676_v16 = vpop.eup %675  ;;  %687 = vrcp.f32 %v438_v10 }
 0x240   :  { %v678_v19 = vpop.eup %677  ;;  %v457_v20 = vmul.f32 %v676_v16, %v385_v35  ;;  %689 = vrcp.f32 %v436_v15 }
 0x241   :  { %v680_v21 = vpop.eup %679  ;;  %v455_v22 = vmul.f32 %v678_v19, %v377_v37 }
 0x242   :  { %v682_v23 = vpop.eup %681  ;;  %v465_v24 = vadd.f32 %v457_v20, %v874_v11  ;;  %v458_v25 = vmul.f32 %v680_v21, %v388_v40 }
 0x243   :  { %v463_v26 = vadd.f32 %v455_v22, %v868_v4  ;;  %v456_v27 = vmul.f32 %v682_v23, %v380_v43 }
 0x244   :  { %473 = vst [vmem:[#allocation8 + $0x10] sm:$0xff] %v465_v24  ;;  %v466_v28 = vadd.f32 %v458_v25, %v876_v12 }
 0x245   :  { %471 = vst [vmem:[#allocation8] sm:$0xff] %v463_v26  ;;  %v464_v29 = vadd.f32 %v456_v27, %v870_v5 }
 0x246   :  { %474 = vst [vmem:[#allocation8 + $0x18] sm:$0xff] %v466_v28 }
 0x247   :  { %v684_v31 = vpop.eup %683  ;;  %472 = vst [vmem:[#allocation8 + $0x8] sm:$0xff] %v464_v29 }
 0x248   :  { %v686_v33 = vpop.eup %685  ;;  %v461_v34 = vmul.f32 %v684_v31, %v401_v47 }
 0x249   :  { %v688_v30 = vpop.eup %687  ;;  %v459_v32 = vmul.f32 %v686_v33, %v393_v49 }
 0x24a   :  { %v690_v35 = vpop.eup %689  ;;  %v469_v11 = vadd.f32 %v461_v34, %v886_v17  ;;  %v462_v36 = vmul.f32 %v688_v30, %v404_v52 }
 0x24b   :  { %v467_v4 = vadd.f32 %v459_v32, %v878_v13  ;;  %v460_v37 = vmul.f32 %v690_v35, %v396_v55 }
 0x24c   :  { %477 = vst [vmem:[#allocation8 + $0x30] sm:$0xff] %v469_v11  ;;  %v470_v12 = vadd.f32 %v462_v36, %v888_v18 }
 0x24d   :  { %475 = vst [vmem:[#allocation8 + $0x20] sm:$0xff] %v467_v4  ;;  %v468_v5 = vadd.f32 %v460_v37, %v880_v14 }
 0x24e   :  { %478 = vst [vmem:[#allocation8 + $0x38] sm:$0xff] %v470_v12 }
 0x24f   :  { %476 = vst [vmem:[#allocation8 + $0x28] sm:$0xff] %v468_v5 }
 0x250   :  { %768 = shalt.err (!%p765_p0)
}
 0x251   :  { %s769_s12 = scalar_lea.hbm %s926_s5, 1024 }
 0x252   :  { %p770_p1 = scmp.ne.s32.totalorder %s926_s5, %s769_s12  ;;  %p773_p2 = scmp.lt.u32.totalorder %s769_s12, %s926_s5 }
 0x254   :  { %p775_p3 = pnand %p773_p2, %p770_p1 }
 0x256   :  { %778 = shalt.err (!%p775_p3)
}
 0x257   :  { %490 = dma.vmem_to_hbm [thread:$0]  %s485_s8, 1024, %s926_s5, [#allocation4], %s789_s1, %s789_s1, %s790_s17  }
 0x258   :  { %783 = dma.done.wait [#allocation4], 1024  }
 0x259   :  { %784 = vsyncadd [#allocation4], 4294966272 }
 0x25a   :  { %494 = vsyncpa [#allocation3], 1 }
 0x25b   :  { %495 = vsyncpa [#allocation6], 1 }
 0x25c   :  { %496 = vsyncpa [#allocation4], 1 }

// kernel: tpu_custom_call.1
= control target key start
LH: loop header
LB: loop body
LE: loop exit
PB: predicated region body
PF: predicated region fallthrough
CT: control target
= control target key end

     0   :  { %10 = vsyncpa [#allocation3], 0  ;;  %s921_s0 = inlined_call_operand.hbm [shape: f32[64,128], index: 0, kind: input, shape index: {}]   ;;  %s922_s1 = inlined_call_operand.hbm [shape: bf16[128,128], index: 1, kind: input, shape index: {}]   ;;  %s923_s2 = inlined_call_operand.vmem [shape: f32[1,128], index: 2, kind: input, shape index: {}]   ;;  %s924_s3 = inlined_call_operand.hbm [shape: bf16[128,128], index: 3, kind: input, shape index: {}]   ;;  %s925_s4 = inlined_call_operand.vmem [shape: f32[1,128], index: 4, kind: input, shape index: {}]   ;;  %s926_s5 = inlined_call_operand.hbm [shape: f32[64,128], index: 5, kind: output, shape index: {}]  }
   0x1   :  { %11 = vsyncpa [#allocation6], 0 }
   0x2   :  { %12 = vsyncpa [#allocation4], 0  ;;  %s785_s18 = smov [#allocation5]   ;;  %s691_s22 = scalar_lea.hbm %s922_s1, 1024 }
   0x3   :  { %s30_s19 = sshll.u32 %s785_s18, 4  ;;  %p692_p0 = scmp.ne.s32.totalorder %s922_s1, %s691_s22  ;;  %s31_s19 = int_to_ptr.vmem [resolvable:$true] %s30_s19 }
   0x4   :  { %p695_p1 = scmp.lt.u32.totalorder %s691_s22, %s922_s1 }
   0x6   :  { %p697_p2 = pnand %p695_p1, %p692_p0 }
   0x8   :  { %700 = shalt.err (!%p697_p2)
}
   0x9   :  { %s701_s27 = scalar_lea.vmem %s31_s19, 1024  ;;  %p706_p4 = scmp.lt.s32.totalorder %s31_s19, %s31_s19 }
   0xa   :  { %p702_p3 = scmp.ne.s32.totalorder %s31_s19, %s701_s27  ;;  %p707_p5 = scmp.lt.s32.totalorder %s701_s27, %s701_s27 }
   0xc   :  { %p708_p6 = por %p707_p5, %p706_p4 }
   0xe   :  { %p709_p7 = pnand %p708_p6, %p702_p3 }
  0x10   :  { %712 = shalt.err (!%p709_p7)
}
  0x11   :  { %s786_s28 = smov 64   ;;  %s787_s29 = smov 4  }
  0x12   :  { %36 = dma.hbm_to_vmem [thread:$0]  %s922_s1, 1024, %s31_s19, [#allocation6], %s786_s28, %s786_s28, %s787_s29  }
  0x13   :  { %s788_s7 = smov [#allocation2]   ;;  %s713_s11 = scalar_lea.hbm %s921_s0, 1024 }
  0x14   :  { %s18_s8 = sshll.u32 %s788_s7, 4  ;;  %p714_p8 = scmp.ne.s32.totalorder %s921_s0, %s713_s11  ;;  %s19_s8 = int_to_ptr.vmem [resolvable:$true] %s18_s8 }
  0x15   :  { %p717_p9 = scmp.lt.u32.totalorder %s713_s11, %s921_s0 }
  0x17   :  { %p719_p10 = pnand %p717_p9, %p714_p8 }
  0x19   :  { %722 = shalt.err (!%p719_p10)
}
  0x1a   :  { %s723_s16 = scalar_lea.vmem %s19_s8, 1024  ;;  %p728_p12 = scmp.lt.s32.totalorder %s19_s8, %s19_s8 }
  0x1b   :  { %p724_p11 = scmp.ne.s32.totalorder %s19_s8, %s723_s16  ;;  %p729_p13 = scmp.lt.s32.totalorder %s723_s16, %s723_s16 }
  0x1d   :  { %p730_p0 = por %p729_p13, %p728_p12 }
  0x1f   :  { %p731_p1 = pnand %p730_p0, %p724_p11 }
  0x21   :  { %734 = shalt.err (!%p731_p1)
}
  0x22   :  { %s789_s1 = smov 128   ;;  %s790_s17 = smov 8  }
  0x23   :  { %24 = dma.hbm_to_vmem [thread:$0]  %s921_s0, 1024, %s19_s8, [#allocation3], %s789_s1, %s789_s1, %s790_s17  }
  0x24   :  { %s791_s20 = smov [#allocation7]   ;;  %s735_s24 = scalar_lea.hbm %s924_s3, 1024 }
  0x25   :  { %s44_s21 = sshll.u32 %s791_s20, 4  ;;  %p736_p2 = scmp.ne.s32.totalorder %s924_s3, %s735_s24  ;;  %s45_s21 = int_to_ptr.vmem [resolvable:$true] %s44_s21 }
  0x26   :  { %p739_p3 = scmp.lt.u32.totalorder %s735_s24, %s924_s3 }
  0x28   :  { %p741_p4 = pnand %p739_p3, %p736_p2 }
  0x2a   :  { %744 = shalt.err (!%p741_p4)
}
  0x2b   :  { %s745_s6 = scalar_lea.vmem %s45_s21, 1024  ;;  %p750_p6 = scmp.lt.s32.totalorder %s45_s21, %s45_s21 }
  0x2c   :  { %p746_p5 = scmp.ne.s32.totalorder %s45_s21, %s745_s6  ;;  %p751_p7 = scmp.lt.s32.totalorder %s745_s6, %s745_s6 }
  0x2e   :  { %p752_p8 = por %p751_p7, %p750_p6 }
  0x30   :  { %p753_p9 = pnand %p752_p8, %p746_p5 }
  0x32   :  { %756 = shalt.err (!%p753_p9)
}
  0x33   :  { %50 = dma.hbm_to_vmem [thread:$0]  %s924_s3, 1024, %s45_s21, [#allocation6], %s786_s28, %s786_s28, %s787_s29  }
  0x34   :  { %779 = dma.done.wait [#allocation3], 1024  }
  0x35   :  { %780 = vsyncadd [#allocation3], 4294966272 }
  0x36   :  { %781 = dma.done.wait [#allocation6], 2048  }
  0x37   :  { %782 = vsyncadd [#allocation6], 4294965248  ;;  %v611_v0 = vld [vmem:[#allocation5] sm:$0xff]   ;;  %v612_v1 = vld [vmem:[#allocation5 + $0x8] sm:$0xff]  }
  0x38   :  { %555 = vmatprep.subr.bf16.mxu0 %v611_v0  ;;  %v613_v2 = vld [vmem:[#allocation5 + $0x10] sm:$0xff]   ;;  %v614_v3 = vld [vmem:[#allocation5 + $0x18] sm:$0xff]   ;;  %v868_v4 = vld [vmem:[#allocation2] sm:$0xff] }
  0x39   :  { %556 = vmatpush3.bf16.msra.mxu0 %v611_v0  ;;  %v870_v5 = vld [vmem:[#allocation2 + $0x8] sm:$0xff]  ;;  %v615_v7 = vld [vmem:[#allocation5 + $0x20] sm:$0xff]   ;;  %v617_v9 = vld [vmem:[#allocation5 + $0x30] sm:$0xff]  }
  0x3a   :  { %557 = vmatprep.subr.bf16.mxu0 %v612_v1  ;;  %v73_v6 = vpack.c.bf16 %v870_v5, %v868_v4  ;;  %v616_v8 = vld [vmem:[#allocation5 + $0x28] sm:$0xff]   ;;  %v618_v10 = vld [vmem:[#allocation5 + $0x38] sm:$0xff]   ;;  %v874_v11 = vld [vmem:[#allocation2 + $0x10] sm:$0xff] }
  0x3b   :  { %v876_v12 = vld [vmem:[#allocation2 + $0x18] sm:$0xff]  ;;  %v878_v13 = vld [vmem:[#allocation2 + $0x20] sm:$0xff]  ;;  %v880_v14 = vld [vmem:[#allocation2 + $0x28] sm:$0xff] }
  0x3c   :  { %571 = vmatprep.mubr.bf16.mxu0 %v73_v6  ;;  %v74_v15 = vpack.c.bf16 %v876_v12, %v874_v11  ;;  %v75_v16 = vpack.c.bf16 %v880_v14, %v878_v13  ;;  %v886_v17 = vld [vmem:[#allocation2 + $0x30] sm:$0xff]  ;;  %v888_v18 = vld [vmem:[#allocation2 + $0x38] sm:$0xff]  ;;  %v619_v20 = vld [vmem:[#allocation7] sm:$0xff]  }
  0x3d   :  { %558 = vmatpush3.bf16.msra.mxu0 %v612_v1  ;;  %v76_v19 = vpack.c.bf16 %v888_v18, %v886_v17  ;;  %579 = vmatprep.subr.bf16.mxu1 %v619_v20  ;;  %v620_v21 = vld [vmem:[#allocation7 + $0x8] sm:$0xff]   ;;  %v621_v22 = vld [vmem:[#allocation7 + $0x10] sm:$0xff]   ;;  %v622_v23 = vld [vmem:[#allocation7 + $0x18] sm:$0xff]  }
  0x3e   :  { %559 = vmatprep.subr.bf16.mxu0 %v613_v2  ;;  %580 = vmatpush3.bf16.msra.mxu1 %v619_v20  ;;  %v623_v24 = vld [vmem:[#allocation7 + $0x20] sm:$0xff]   ;;  %v624_v25 = vld [vmem:[#allocation7 + $0x28] sm:$0xff]   ;;  %v625_v26 = vld [vmem:[#allocation7 + $0x30] sm:$0xff]  }
  0x3f   :  { %581 = vmatprep.subr.bf16.mxu1 %v620_v21  ;;  %v626_v27 = vld [vmem:[#allocation7 + $0x38] sm:$0xff]   ;;  %v497_v28 = vld [vmem:[%s923_s2] ss:$0 sm:$0xff] }
  0x41   :  { %560 = vmatpush3.bf16.msra.mxu0 %v613_v2 }
  0x42   :  { %561 = vmatprep.subr.bf16.mxu0 %v614_v3  ;;  %582 = vmatpush3.bf16.msra.mxu1 %v620_v21 }
  0x43   :  { %583 = vmatprep.subr.bf16.mxu1 %v621_v22 }
  0x45   :  { %562 = vmatpush3.bf16.msra.mxu0 %v614_v3 }
  0x46   :  { %563 = vmatprep.subr.bf16.mxu0 %v615_v7  ;;  %584 = vmatpush3.bf16.msra.mxu1 %v621_v22 }
  0x47   :  { %585 = vmatprep.subr.bf16.mxu1 %v622_v23 }
  0x49   :  { %564 = vmatpush3.bf16.msra.mxu0 %v615_v7 }
  0x4a   :  { %565 = vmatprep.subr.bf16.mxu0 %v616_v8  ;;  %586 = vmatpush3.bf16.msra.mxu1 %v622_v23 }
  0x4b   :  { %587 = vmatprep.subr.bf16.mxu1 %v623_v24 }
  0x4d   :  { %566 = vmatpush3.bf16.msra.mxu0 %v616_v8 }
  0x4e   :  { %567 = vmatprep.subr.bf16.mxu0 %v617_v9  ;;  %588 = vmatpush3.bf16.msra.mxu1 %v623_v24 }
  0x4f   :  { %589 = vmatprep.subr.bf16.mxu1 %v624_v25 }
  0x51   :  { %568 = vmatpush3.bf16.msra.mxu0 %v617_v9 }
  0x52   :  { %569 = vmatprep.subr.bf16.mxu0 %v618_v10  ;;  %590 = vmatpush3.bf16.msra.mxu1 %v624_v25 }
  0x53   :  { %591 = vmatprep.subr.bf16.mxu1 %v625_v26 }
  0x55   :  { %570 = vmatpush3.bf16.msra.mxu0 %v618_v10 }
  0x56   :  { %592 = vmatpush3.bf16.msra.mxu1 %v625_v26 }
  0x57   :  { %593 = vmatprep.subr.bf16.mxu1 %v626_v27 }
  0x58   :  { %572 = vmatmul.mubr.bf16.vlgmr.msra.gmra.mrb[0].mxu0 %v74_v15 }
  0x59   :  { %575 = vmatprep.mubr.bf16.mxu0 %v75_v16 }
  0x5a   :  { %594 = vmatpush3.bf16.msra.mxu1 %v626_v27 }
  0x60   :  { %576 = vmatmul.mubr.bf16.gmra.mrb[4].mxu0 %v76_v19 }
 0x12b   :  { %v573_v29 = vpop.f32.mrb[0].mxu0 }
 0x12c   :  { %v190_v30 = vadd.f32 %v573_v29, %v497_v28  ;;  %v181_v31 = vpop.f32.mrb[1].mxu0 }
 0x12d   :  { %v182_v32 = vadd.f32 %v497_v28, %v181_v31  ;;  %v574_v33 = vpop.f32.mrb[2].mxu0 }
 0x12e   :  { %v508_v34 = vmul.f32 -1.442695, %v190_v30  ;;  %v193_v35 = vadd.f32 %v574_v33, %v497_v28  ;;  %v184_v36 = vpop.f32.mrb[3].mxu0 }
 0x12f   :  { %v506_v37 = vmul.f32 -1.442695, %v182_v32  ;;  %v185_v38 = vadd.f32 %v497_v28, %v184_v36 }
 0x130   :  { %627 = vpow2.f32 %v508_v34  ;;  %v509_v39 = vmul.f32 -1.442695, %v193_v35 }
 0x131   :  { %629 = vpow2.f32 %v506_v37  ;;  %v507_v40 = vmul.f32 -1.442695, %v185_v38 }
 0x132   :  { %631 = vpow2.f32 %v509_v39 }
 0x133   :  { %633 = vpow2.f32 %v507_v40  ;;  %v577_v41 = vpop.f32.mrb[4].mxu0 }
 0x134   :  { %v206_v42 = vadd.f32 %v577_v41, %v497_v28  ;;  %v197_v43 = vpop.f32.mrb[5].mxu0 }
 0x135   :  { %v198_v44 = vadd.f32 %v497_v28, %v197_v43  ;;  %v578_v45 = vpop.f32.mrb[6].mxu0 }
 0x136   :  { %v512_v46 = vmul.f32 -1.442695, %v206_v42  ;;  %v209_v47 = vadd.f32 %v578_v45, %v497_v28  ;;  %v200_v48 = vpop.f32.mrb[7].mxu0 }
 0x137   :  { %v510_v49 = vmul.f32 -1.442695, %v198_v44  ;;  %v201_v50 = vadd.f32 %v497_v28, %v200_v48 }
 0x138   :  { %635 = vpow2.f32 %v512_v46  ;;  %v513_v51 = vmul.f32 -1.442695, %v209_v47 }
 0x139   :  { %637 = vpow2.f32 %v510_v49  ;;  %v511_v52 = vmul.f32 -1.442695, %v201_v50 }
 0x13a   :  { %v628_v53 = vpop.eup %627  ;;  %639 = vpow2.f32 %v513_v51 }
 0x13b   :  { %v630_v54 = vpop.eup %629  ;;  %v238_v55 = vadd.f32 1.0, %v628_v53  ;;  %641 = vpow2.f32 %v511_v52 }
 0x13c   :  { %v632_v56 = vpop.eup %631  ;;  %v236_v57 = vadd.f32 1.0, %v630_v54 }
 0x13d   :  { %v634_v58 = vpop.eup %633  ;;  %643 = vrcp.f32 %v238_v55  ;;  %v239_v59 = vadd.f32 1.0, %v632_v56 }
 0x13e   :  { %645 = vrcp.f32 %v236_v57  ;;  %v237_v60 = vadd.f32 1.0, %v634_v58 }
 0x13f   :  { %647 = vrcp.f32 %v239_v59 }
 0x140   :  { %649 = vrcp.f32 %v237_v60 }
 0x142   :  { %v636_v61 = vpop.eup %635 }
 0x143   :  { %v638_v62 = vpop.eup %637  ;;  %v242_v63 = vadd.f32 1.0, %v636_v61 }
 0x144   :  { %v640_v0 = vpop.eup %639  ;;  %v240_v1 = vadd.f32 1.0, %v638_v62 }
 0x145   :  { %v642_v2 = vpop.eup %641  ;;  %651 = vrcp.f32 %v242_v63  ;;  %v243_v3 = vadd.f32 1.0, %v640_v0 }
 0x146   :  { %653 = vrcp.f32 %v240_v1  ;;  %v241_v6 = vadd.f32 1.0, %v642_v2 }
 0x147   :  { %v644_v7 = vpop.eup %643  ;;  %655 = vrcp.f32 %v243_v3 }
 0x148   :  { %v646_v8 = vpop.eup %645  ;;  %657 = vrcp.f32 %v241_v6  ;;  %v262_v15 = vmul.f32 %v644_v7, %v190_v30  ;;  %v514_v30 = vld [vmem:[%s925_s4] ss:$0 sm:$0xff]  ;;  %s792_s4 = smov [#allocation8]  }
 0x149   :  { %v648_v9 = vpop.eup %647  ;;  %v260_v19 = vmul.f32 %v646_v8, %v182_v32  ;;  %s484_s8 = sshll.u32 %s792_s4, 4  ;;  %s485_s8 = int_to_ptr.vmem [resolvable:$true] %s484_s8 }
 0x14a   :  { %v650_v10 = vpop.eup %649  ;;  %v263_v16 = vmul.f32 %v648_v9, %v193_v35  ;;  %s757_s9 = scalar_lea.vmem %s485_s8, 1024  ;;  %p762_p11 = scmp.lt.s32.totalorder %s485_s8, %s485_s8 }
 0x14b   :  { %v261_v20 = vmul.f32 %v650_v10, %v185_v38  ;;  %p758_p10 = scmp.ne.s32.totalorder %s485_s8, %s757_s9  ;;  %p763_p12 = scmp.lt.s32.totalorder %s757_s9, %s757_s9 }
 0x14c   :  { %v269_v21 = vpack.c.bf16 %v263_v16, %v262_v15 }
 0x14d   :  { %v268_v22 = vpack.c.bf16 %v261_v20, %v260_v19  ;;  %p764_p13 = por %p763_p12, %p762_p11 }
 0x14f   :  { %v652_v23 = vpop.eup %651  ;;  %595 = vmatprep.mubr.bf16.mxu1 %v268_v22  ;;  %p765_p0 = pnand %p764_p13, %p758_p10 }
 0x150   :  { %v654_v24 = vpop.eup %653  ;;  %596 = vmatmul.mubr.bf16.vlgmr.msra.gmra.mrb[0].mxu1 %v269_v21  ;;  %v266_v27 = vmul.f32 %v652_v23, %v206_v42 }
 0x151   :  { %v656_v25 = vpop.eup %655  ;;  %v264_v29 = vmul.f32 %v654_v24, %v198_v44 }
 0x152   :  { %v658_v26 = vpop.eup %657  ;;  %v267_v28 = vmul.f32 %v656_v25, %v209_v47 }
 0x153   :  { %v265_v31 = vmul.f32 %v658_v26, %v201_v50 }
 0x154   :  { %v271_v33 = vpack.c.bf16 %v267_v28, %v266_v27 }
 0x155   :  { %v270_v34 = vpack.c.bf16 %v265_v31, %v264_v29 }
 0x157   :  { %599 = vmatprep.mubr.bf16.mxu1 %v270_v34 }
 0x158   :  { %600 = vmatmul.mubr.bf16.gmra.mrb[4].mxu1 %v271_v33 }
 0x223   :  { %v597_v32 = vpop.f32.mrb[0].mxu1 }
 0x224   :  { %v385_v35 = vadd.f32 %v597_v32, %v514_v30  ;;  %v376_v36 = vpop.f32.mrb[1].mxu1 }
 0x225   :  { %v377_v37 = vadd.f32 %v514_v30, %v376_v36  ;;  %v598_v38 = vpop.f32.mrb[2].mxu1 }
 0x226   :  { %v525_v39 = vmul.f32 -1.442695, %v385_v35  ;;  %v388_v40 = vadd.f32 %v598_v38, %v514_v30  ;;  %v379_v41 = vpop.f32.mrb[3].mxu1 }
 0x227   :  { %v523_v42 = vmul.f32 -1.442695, %v377_v37  ;;  %v380_v43 = vadd.f32 %v514_v30, %v379_v41 }
 0x228   :  { %659 = vpow2.f32 %v525_v39  ;;  %v526_v44 = vmul.f32 -1.442695, %v388_v40 }
 0x229   :  { %661 = vpow2.f32 %v523_v42  ;;  %v524_v45 = vmul.f32 -1.442695, %v380_v43 }
 0x22a   :  { %663 = vpow2.f32 %v526_v44 }
 0x22b   :  { %665 = vpow2.f32 %v524_v45  ;;  %v601_v46 = vpop.f32.mrb[4].mxu1 }
 0x22c   :  { %v401_v47 = vadd.f32 %v601_v46, %v514_v30  ;;  %v392_v48 = vpop.f32.mrb[5].mxu1 }
 0x22d   :  { %v393_v49 = vadd.f32 %v514_v30, %v392_v48  ;;  %v602_v50 = vpop.f32.mrb[6].mxu1 }
 0x22e   :  { %v529_v51 = vmul.f32 -1.442695, %v401_v47  ;;  %v404_v52 = vadd.f32 %v602_v50, %v514_v30  ;;  %v395_v53 = vpop.f32.mrb[7].mxu1 }
 0x22f   :  { %v527_v54 = vmul.f32 -1.442695, %v393_v49  ;;  %v396_v55 = vadd.f32 %v514_v30, %v395_v53 }
 0x230   :  { %667 = vpow2.f32 %v529_v51  ;;  %v530_v56 = vmul.f32 -1.442695, %v404_v52 }
 0x231   :  { %669 = vpow2.f32 %v527_v54  ;;  %v528_v57 = vmul.f32 -1.442695, %v396_v55 }
 0x232   :  { %v660_v58 = vpop.eup %659  ;;  %671 = vpow2.f32 %v530_v56 }
 0x233   :  { %v662_v59 = vpop.eup %661  ;;  %v433_v60 = vadd.f32 1.0, %v660_v58  ;;  %673 = vpow2.f32 %v528_v57 }
 0x234   :  { %v664_v61 = vpop.eup %663  ;;  %v431_v62 = vadd.f32 1.0, %v662_v59 }
 0x235   :  { %v666_v63 = vpop.eup %665  ;;  %675 = vrcp.f32 %v433_v60  ;;  %v434_v0 = vadd.f32 1.0, %v664_v61 }
 0x236   :  { %677 = vrcp.f32 %v431_v62  ;;  %v432_v1 = vadd.f32 1.0, %v666_v63 }
 0x237   :  { %679 = vrcp.f32 %v434_v0 }
 0x238   :  { %681 = vrcp.f32 %v432_v1 }
 0x23a   :  { %v668_v2 = vpop.eup %667 }
 0x23b   :  { %v670_v3 = vpop.eup %669  ;;  %v437_v6 = vadd.f32 1.0, %v668_v2 }
 0x23c   :  { %v672_v7 = vpop.eup %671  ;;  %v435_v8 = vadd.f32 1.0, %v670_v3 }
 0x23d   :  { %v674_v9 = vpop.eup %673  ;;  %683 = vrcp.f32 %v437_v6  ;;  %v438_v10 = vadd.f32 1.0, %v672_v7 }
 0x23e   :  { %685 = vrcp.f32 %v435_v8  ;;  %v436_v15 = vadd.f32 1.0, %v674_v9 }
 0x23f   :  { %v676_v16 = vpop.eup %675  ;;  %687 = vrcp.f32 %v438_v10 }
 0x240   :  { %v678_v19 = vpop.eup %677  ;;  %v457_v20 = vmul.f32 %v676_v16, %v385_v35  ;;  %689 = vrcp.f32 %v436_v15 }
 0x241   :  { %v680_v21 = vpop.eup %679  ;;  %v455_v22 = vmul.f32 %v678_v19, %v377_v37 }
 0x242   :  { %v682_v23 = vpop.eup %681  ;;  %v465_v24 = vadd.f32 %v457_v20, %v874_v11  ;;  %v458_v25 = vmul.f32 %v680_v21, %v388_v40 }
 0x243   :  { %v463_v26 = vadd.f32 %v455_v22, %v868_v4  ;;  %v456_v27 = vmul.f32 %v682_v23, %v380_v43 }
 0x244   :  { %473 = vst [vmem:[#allocation8 + $0x10] sm:$0xff] %v465_v24  ;;  %v466_v28 = vadd.f32 %v458_v25, %v876_v12 }
 0x245   :  { %471 = vst [vmem:[#allocation8] sm:$0xff] %v463_v26  ;;  %v464_v29 = vadd.f32 %v456_v27, %v870_v5 }
 0x246   :  { %474 = vst [vmem:[#allocation8 + $0x18] sm:$0xff] %v466_v28 }
 0x247   :  { %v684_v31 = vpop.eup %683  ;;  %472 = vst [vmem:[#allocation8 + $0x8] sm:$0xff] %v464_v29 }
 0x248   :  { %v686_v33 = vpop.eup %685  ;;  %v461_v34 = vmul.f32 %v684_v31, %v401_v47 }
 0x249   :  { %v688_v30 = vpop.eup %687  ;;  %v459_v32 = vmul.f32 %v686_v33, %v393_v49 }
 0x24a   :  { %v690_v35 = vpop.eup %689  ;;  %v469_v11 = vadd.f32 %v461_v34, %v886_v17  ;;  %v462_v36 = vmul.f32 %v688_v30, %v404_v52 }
 0x24b   :  { %v467_v4 = vadd.f32 %v459_v32, %v878_v13  ;;  %v460_v37 = vmul.f32 %v690_v35, %v396_v55 }
 0x24c   :  { %477 = vst [vmem:[#allocation8 + $0x30] sm:$0xff] %v469_v11  ;;  %v470_v12 = vadd.f32 %v462_v36, %v888_v18 }
 0x24d   :  { %475 = vst [vmem:[#allocation8 + $0x20] sm:$0xff] %v467_v4  ;;  %v468_v5 = vadd.f32 %v460_v37, %v880_v14 }
 0x24e   :  { %478 = vst [vmem:[#allocation8 + $0x38] sm:$0xff] %v470_v12 }
 0x24f   :  { %476 = vst [vmem:[#allocation8 + $0x28] sm:$0xff] %v468_v5 }
 0x250   :  { %768 = shalt.err (!%p765_p0)
}
 0x251   :  { %s769_s12 = scalar_lea.hbm %s926_s5, 1024 }
 0x252   :  { %p770_p1 = scmp.ne.s32.totalorder %s926_s5, %s769_s12  ;;  %p773_p2 = scmp.lt.u32.totalorder %s769_s12, %s926_s5 }
 0x254   :  { %p775_p3 = pnand %p773_p2, %p770_p1 }
 0x256   :  { %778 = shalt.err (!%p775_p3)
}
 0x257   :  { %490 = dma.vmem_to_hbm [thread:$0]  %s485_s8, 1024, %s926_s5, [#allocation4], %s789_s1, %s789_s1, %s790_s17  }
 0x258   :  { %783 = dma.done.wait [#allocation4], 1024  }
 0x259   :  { %784 = vsyncadd [#allocation4], 4294966272 }
 0x25a   :  { %494 = vsyncpa [#allocation3], 1 }
 0x25b   :  { %495 = vsyncpa [#allocation6], 1 }
 0x25c   :  { %496 = vsyncpa [#allocation4], 1 }

</bundles_post_ra>
